<compile_context>
chip_gen: v6e
topology: v6e:2x2x1
jax: 0.10.0
libtpu: 0.0.40
codegen_flags: <defaults>
</compile_context>

<pallas_src>
import functools

import jax
import jax.numpy as jnp
from jax import lax
from jax.experimental import pallas as pl
from jax.experimental.pallas import tpu as pltpu


def actor_kernel(s_ref, w1_ref, b1_ref, w2_ref, b2_ref, w3_ref, b3_ref, o_ref, *, mxu_dtype):
    # s_ref is batch-major (tile_b, state_dim); layer 1 contracts the feature axis of both
    # operands (W1 @ x^T on the MXU), so h1/h2/h3 are feature-major -> batch on the 128-lane
    # axis and the HBM output store is lane-dense.
    x = s_ref[...].astype(mxu_dtype)                                   # (tile_b, state_dim)

    # Layer 1: (mid_dim, state_dim) x (tile_b, state_dim)^T -> (mid_dim, tile_b), f32 acc.
    h1 = lax.dot_general(
        w1_ref[...], x,
        dimension_numbers=(((1,), (1,)), ((), ())),
        preferred_element_type=jnp.float32,
    )
    # Bias + ReLU in f32; fuse the bf16 cast so only the bf16 copy stays live (VMEM).
    h1 = jnp.maximum(h1 + b1_ref[...], 0.0).astype(mxu_dtype)

    # Layer 2: Linear + ReLU.
    h2 = jnp.dot(w2_ref[...], h1, preferred_element_type=jnp.float32)
    h2 = jnp.maximum(h2 + b2_ref[...], 0.0).astype(mxu_dtype)

    # Layer 3: Linear + Tanh (EUP), elementwise in f32, lane-dense store.
    h3 = jnp.dot(w3_ref[...], h2, preferred_element_type=jnp.float32)
    o_ref[...] = jnp.tanh(h3 + b3_ref[...]).astype(o_ref.dtype)


def _choose_tile_b(batch, state_dim, mid_dim, action_dim, s_itemsize):
    """VMEM-aware batch-tile choice. Returns (tile_b, num_tiles)."""
    # Rough per-batch-element VMEM bytes: double-buffered input+output tiles, bf16 x,
    # f32+bf16 h1/h2, f32 h3.
    per_elem = (2 * state_dim * s_itemsize + 2 * action_dim * 4
                + 2 * state_dim + 2 * mid_dim * 6 + 4 * action_dim)
    budget = 24 * 1024 * 1024                       # headroom under the scoped limit we request
    cap = max(128, min(16384, (budget // per_elem) // 128 * 128))
    if batch <= min(4096, cap):
        # Single grid step over the whole batch: no padding, no per-step overhead.
        return batch, 1
    # Large batch: smallest EVEN tile count whose tile width fits the VMEM cap, so the
    # ("parallel",) grid axis feeds v7x's two TensorCores evenly (no-op on v5e/v6e).
    n = 2
    while True:
        tile_b = pl.cdiv(pl.cdiv(batch, n), 128) * 128
        if tile_b <= cap:
            return tile_b, n
        n += 2


def prepare_actor_params(w1, b1, w2, b2, w3, b3, mxu_dtype=jnp.bfloat16):
    """Hoist the f32->bf16 weight casts out of the per-call path (call once, reuse)."""
    f32 = jnp.float32
    return (w1.astype(mxu_dtype), b1.astype(f32),
            w2.astype(mxu_dtype), b2.astype(f32),
            w3.astype(mxu_dtype), b3.astype(f32))


def actor_forward(s, w1, b1, w2, b2, w3, b3, *, tile_b=None, mxu_dtype=jnp.bfloat16):
    """s: (batch, state_dim); W (out, in); b (out, 1). Returns (batch, action_dim) f32."""
    batch, state_dim = s.shape
    mid_dim = w1.shape[0]
    action_dim = w3.shape[0]

    if tile_b is None:
        tile_b, num_tiles = _choose_tile_b(batch, state_dim, mid_dim, action_dim,
                                           s.dtype.itemsize)
    else:
        num_tiles = pl.cdiv(batch, tile_b)
    padded = tile_b * num_tiles

    # Batch-major state straight into the kernel; pad rows only on the tiled path.
    s_in = s if padded == batch else jnp.pad(s, ((0, padded - batch), (0, 0)))

    # Weights should already be mxu_dtype (prepare_actor_params); cast only as a fallback.
    cast = lambda w: w if w.dtype == mxu_dtype else w.astype(mxu_dtype)
    w1m, w2m, w3m = cast(w1), cast(w2), cast(w3)

    def resident(shape):
        # Constant block index -> stays VMEM-resident across all grid steps (DMA'd once).
        # (pl.Buffered(1) would halve its double-buffered footprint; negligible here.)
        return pl.BlockSpec(shape, lambda i: (0, 0))

    weight_bytes = sum(a.size * a.dtype.itemsize for a in (w1m, b1, w2m, b2, w3m, b3))
    # VMEM actually needed: double-buffered streamed tiles + intermediates + 2x resident weights.
    vmem_needed = (
        2 * tile_b * state_dim * s_in.dtype.itemsize
        + 2 * tile_b * action_dim * 4
        + tile_b * (2 * state_dim + 2 * mid_dim * 6 + 4 * action_dim)
        + 2 * weight_bytes
    )
    # Keep the requested scoped limit well under v7x's 64 MiB physical VMEM.
    vmem_limit = int(min(max(vmem_needed * 5 // 4, 16 * 1024 * 1024), 48 * 1024 * 1024))

    flops = 2 * padded * (state_dim * mid_dim + mid_dim * mid_dim + mid_dim * action_dim)
    bytes_accessed = (s_in.size * s_in.dtype.itemsize + weight_bytes + padded * action_dim * 4)

    out_t = pl.pallas_call(
        functools.partial(actor_kernel, mxu_dtype=mxu_dtype),
        out_shape=jax.ShapeDtypeStruct((action_dim, padded), jnp.float32),
        grid=(num_tiles,),
        in_specs=[
            pl.BlockSpec((tile_b, state_dim), lambda i: (i, 0)),   # batch-tiled, batch-major
            resident((mid_dim, state_dim)),
            resident((mid_dim, 1)),
            resident((mid_dim, mid_dim)),
            resident((mid_dim, 1)),
            resident((action_dim, mid_dim)),
            resident((action_dim, 1)),
        ],
        out_specs=pl.BlockSpec((action_dim, tile_b), lambda i: (0, i)),
        compiler_params=pltpu.CompilerParams(
            dimension_semantics=("parallel",),     # v7x: shard batch tiles across both TCs
            vmem_limit_bytes=vmem_limit,
        ),
        cost_estimate=pl.CostEstimate(
            flops=flops,
            transcendentals=padded * action_dim,
            bytes_accessed=bytes_accessed,
        ),
    )(s_in, w1m, b1, w2m, b2, w3m, b3)

    # (action_dim, padded) -> (batch, action_dim); drop padded lanes. Tiny layout op.
    return out_t[:, :batch].T


def init_params(key, state_dim, action_dim, mid_dim):
    """Deterministic synthetic init, PyTorch-Linear-like: W (out, in), b (out, 1)."""
    keys = jax.random.split(key, 6)

    def lin(kw, kb, fan_in, fan_out):
        bound = 1.0 / jnp.sqrt(fan_in)
        w = jax.random.uniform(kw, (fan_out, fan_in), jnp.float32, -bound, bound)
        b = jax.random.uniform(kb, (fan_out, 1), jnp.float32, -bound, bound)
        return w, b

    w1, b1 = lin(keys[0], keys[1], state_dim, mid_dim)
    w2, b2 = lin(keys[2], keys[3], mid_dim, mid_dim)
    w3, b3 = lin(keys[4], keys[5], mid_dim, action_dim)
    return w1, b1, w2, b2, w3, b3


def _reference(s, w1, b1, w2, b2, w3, b3):
    h1 = jnp.maximum(s @ w1.T + b1.T, 0.0)
    h2 = jnp.maximum(h1 @ w2.T + b2.T, 0.0)
    return jnp.tanh(h2 @ w3.T + b3.T)


if __name__ == "__main__":
    state_dim, action_dim, mid_dim = 16, 4, 32
    batch = 8  # tiny demo batch: single grid step, no padding, no transpose

    key = jax.random.PRNGKey(0)
    k_params, k_s, k_big = jax.random.split(key, 3)
    w1, b1, w2, b2, w3, b3 = init_params(k_params, state_dim, action_dim, mid_dim)
    s = jax.random.normal(k_s, (batch, state_dim), jnp.float32)

    params = prepare_actor_params(w1, b1, w2, b2, w3, b3)   # bf16 weight cast hoisted, done once
    actor = jax.jit(actor_forward)

    a = actor(s, *params)
    jax.block_until_ready(a)

    ref = _reference(s, w1, b1, w2, b2, w3, b3)
    assert a.shape == (batch, action_dim)
    assert jnp.allclose(a, ref, atol=2e-2, rtol=2e-2), float(jnp.max(jnp.abs(a - ref)))

    # Smoke-check the multi-tile (padded, 2-tile) path as well; loose tolerance (bf16 MXU).
    s_big = jax.random.normal(k_big, (4500, state_dim), jnp.float32)
    a_big = actor(s_big, *params)
    jax.block_until_ready(a_big)
    ref_big = _reference(s_big, w1, b1, w2, b2, w3, b3)
    assert a_big.shape == (4500, action_dim)
    assert jnp.allclose(a_big, ref_big, atol=5e-2, rtol=5e-2), \
        float(jnp.max(jnp.abs(a_big - ref_big)))

    print("KERNEL_OK")
</pallas_src>

<mosaic_0001>
module attributes {stable_mosaic.version = 11 : i64} {
  func.func @actor_kernel(%arg0: i32, %arg1: memref<8x16xf32, #tpu.memory_space<vmem>>, %arg2: memref<32x16xbf16, #tpu.memory_space<vmem>>, %arg3: memref<32x1xf32, #tpu.memory_space<vmem>>, %arg4: memref<32x32xbf16, #tpu.memory_space<vmem>>, %arg5: memref<32x1xf32, #tpu.memory_space<vmem>>, %arg6: memref<4x32xbf16, #tpu.memory_space<vmem>>, %arg7: memref<4x1xf32, #tpu.memory_space<vmem>>, %arg8: memref<4x8xf32, #tpu.memory_space<vmem>>) attributes {dimension_semantics = [#tpu.dimension_semantics<parallel>], iteration_bounds = array<i64: 1>, scalar_prefetch = 0 : i64, scratch_operands = 0 : i64, tpu.core_type = #tpu.core_type<tc>, window_params = [{transform_indices = @transform_0, window_bounds = array<i64: 8, 16>}, {pipeline_mode = #tpu.pipeline_mode<synchronous>, transform_indices = @transform_1, window_bounds = array<i64: 32, 16>}, {pipeline_mode = #tpu.pipeline_mode<synchronous>, transform_indices = @transform_2, window_bounds = array<i64: 32, 1>}, {pipeline_mode = #tpu.pipeline_mode<synchronous>, transform_indices = @transform_3, window_bounds = array<i64: 32, 32>}, {pipeline_mode = #tpu.pipeline_mode<synchronous>, transform_indices = @transform_4, window_bounds = array<i64: 32, 1>}, {pipeline_mode = #tpu.pipeline_mode<synchronous>, transform_indices = @transform_5, window_bounds = array<i64: 4, 32>}, {pipeline_mode = #tpu.pipeline_mode<synchronous>, transform_indices = @transform_6, window_bounds = array<i64: 4, 1>}, {transform_indices = @transform_7, window_bounds = array<i64: 4, 8>}]} {
    %c0 = arith.constant 0 : index
    %c0_0 = arith.constant 0 : index
    %0 = vector.load %arg1[%c0, %c0_0] : memref<8x16xf32, #tpu.memory_space<vmem>>, vector<8x16xf32>
    %1 = arith.truncf %0 : vector<8x16xf32> to vector<8x16xbf16>
    %c0_1 = arith.constant 0 : index
    %c0_2 = arith.constant 0 : index
    %2 = vector.load %arg2[%c0_1, %c0_2] : memref<32x16xbf16, #tpu.memory_space<vmem>>, vector<32x16xbf16>
    %cst = arith.constant dense<0.000000e+00> : vector<32x8xf32>
    %3 = tpu.matmul %2, %1, %cst {dimension_numbers = #tpu.dot_dimension_numbers<[1], [1], [0], [0], [0, 0, 1, 0], [], []>} : vector<32x16xbf16>, vector<8x16xbf16>, vector<32x8xf32> -> vector<32x8xf32>
    %c0_3 = arith.constant 0 : index
    %c0_4 = arith.constant 0 : index
    %4 = vector.load %arg3[%c0_3, %c0_4] : memref<32x1xf32, #tpu.memory_space<vmem>>, vector<32x1xf32>
    %5 = vector.broadcast %4 : vector<32x1xf32> to vector<32x8xf32>
    %6 = arith.addf %3, %5 : vector<32x8xf32>
    %cst_5 = arith.constant 0.000000e+00 : f32
    %7 = vector.broadcast %cst_5 : f32 to vector<32x8xf32>
    %8 = arith.maximumf %6, %7 : vector<32x8xf32>
    %9 = arith.truncf %8 : vector<32x8xf32> to vector<32x8xbf16>
    %c0_6 = arith.constant 0 : index
    %c0_7 = arith.constant 0 : index
    %10 = vector.load %arg4[%c0_6, %c0_7] : memref<32x32xbf16, #tpu.memory_space<vmem>>, vector<32x32xbf16>
    %cst_8 = arith.constant dense<0.000000e+00> : vector<32x8xf32>
    %11 = tpu.matmul %10, %9, %cst_8 {dimension_numbers = #tpu.dot_dimension_numbers<[1], [0], [0], [1], [0, 0, 1, 1], [], []>} : vector<32x32xbf16>, vector<32x8xbf16>, vector<32x8xf32> -> vector<32x8xf32>
    %c0_9 = arith.constant 0 : index
    %c0_10 = arith.constant 0 : index
    %12 = vector.load %arg5[%c0_9, %c0_10] : memref<32x1xf32, #tpu.memory_space<vmem>>, vector<32x1xf32>
    %13 = vector.broadcast %12 : vector<32x1xf32> to vector<32x8xf32>
    %14 = arith.addf %11, %13 : vector<32x8xf32>
    %cst_11 = arith.constant 0.000000e+00 : f32
    %15 = vector.broadcast %cst_11 : f32 to vector<32x8xf32>
    %16 = arith.maximumf %14, %15 : vector<32x8xf32>
    %17 = arith.truncf %16 : vector<32x8xf32> to vector<32x8xbf16>
    %c0_12 = arith.constant 0 : index
    %c0_13 = arith.constant 0 : index
    %18 = vector.load %arg6[%c0_12, %c0_13] : memref<4x32xbf16, #tpu.memory_space<vmem>>, vector<4x32xbf16>
    %cst_14 = arith.constant dense<0.000000e+00> : vector<4x8xf32>
    %19 = tpu.matmul %18, %17, %cst_14 {dimension_numbers = #tpu.dot_dimension_numbers<[1], [0], [0], [1], [0, 0, 1, 1], [], []>} : vector<4x32xbf16>, vector<32x8xbf16>, vector<4x8xf32> -> vector<4x8xf32>
    %c0_15 = arith.constant 0 : index
    %c0_16 = arith.constant 0 : index
    %20 = vector.load %arg7[%c0_15, %c0_16] : memref<4x1xf32, #tpu.memory_space<vmem>>, vector<4x1xf32>
    %21 = vector.broadcast %20 : vector<4x1xf32> to vector<4x8xf32>
    %22 = arith.addf %19, %21 : vector<4x8xf32>
    %23 = math.tanh %22 : vector<4x8xf32>
    %c0_17 = arith.constant 0 : index
    %c0_18 = arith.constant 0 : index
    %24 = vector.load %arg8[%c0_17, %c0_18] : memref<4x8xf32, #tpu.memory_space<vmem>>, vector<4x8xf32>
    tpu.vector_store %arg8[%c0_17, %c0_18], %23 {strides = array<i32>} : memref<4x8xf32, #tpu.memory_space<vmem>>, vector<4x8xf32>,
    return
  }
  func.func @transform_0(%arg0: i32) -> (i32, i32) {
    %c0_i32 = arith.constant 0 : i32
    %c0_i32_0 = arith.constant 0 : i32
    return %arg0, %c0_i32 : i32, i32
  }
  func.func @transform_1(%arg0: i32) -> (i32, i32) {
    %c0_i32 = arith.constant 0 : i32
    %c0_i32_0 = arith.constant 0 : i32
    %c0_i32_1 = arith.constant 0 : i32
    return %c0_i32, %c0_i32_0 : i32, i32
  }
  func.func @transform_2(%arg0: i32) -> (i32, i32) {
    %c0_i32 = arith.constant 0 : i32
    %c0_i32_0 = arith.constant 0 : i32
    %c0_i32_1 = arith.constant 0 : i32
    return %c0_i32, %c0_i32_0 : i32, i32
  }
  func.func @transform_3(%arg0: i32) -> (i32, i32) {
    %c0_i32 = arith.constant 0 : i32
    %c0_i32_0 = arith.constant 0 : i32
    %c0_i32_1 = arith.constant 0 : i32
    return %c0_i32, %c0_i32_0 : i32, i32
  }
  func.func @transform_4(%arg0: i32) -> (i32, i32) {
    %c0_i32 = arith.constant 0 : i32
    %c0_i32_0 = arith.constant 0 : i32
    %c0_i32_1 = arith.constant 0 : i32
    return %c0_i32, %c0_i32_0 : i32, i32
  }
  func.func @transform_5(%arg0: i32) -> (i32, i32) {
    %c0_i32 = arith.constant 0 : i32
    %c0_i32_0 = arith.constant 0 : i32
    %c0_i32_1 = arith.constant 0 : i32
    return %c0_i32, %c0_i32_0 : i32, i32
  }
  func.func @transform_6(%arg0: i32) -> (i32, i32) {
    %c0_i32 = arith.constant 0 : i32
    %c0_i32_0 = arith.constant 0 : i32
    %c0_i32_1 = arith.constant 0 : i32
    return %c0_i32, %c0_i32_0 : i32, i32
  }
  func.func @transform_7(%arg0: i32) -> (i32, i32) {
    %c0_i32 = arith.constant 0 : i32
    %c0_i32_0 = arith.constant 0 : i32
    return %c0_i32, %arg0 : i32, i32
  }
}

</mosaic_0001>

<bundles_post_ra>
// kernel: actor_forward.1
= control target key start
LH: loop header
LB: loop body
LE: loop exit
PB: predicated region body
PF: predicated region fallthrough
CT: control target
= control target key end

     0   :  { %vm68_vm0 = vcmask 130048   ;;  %v376_v3 = vmov 0   ;;  %s475_s0 = inlined_call_operand.vmem [shape: f32[8,16], index: 0, kind: input, shape index: {}]   ;;  %s476_s1 = inlined_call_operand.vmem [shape: bf16[32,16], index: 1, kind: input, shape index: {}]   ;;  %s477_s2 = inlined_call_operand.vmem [shape: f32[32,1], index: 2, kind: input, shape index: {}]   ;;  %s478_s3 = inlined_call_operand.vmem [shape: bf16[32,32], index: 3, kind: input, shape index: {}]   ;;  %s479_s4 = inlined_call_operand.vmem [shape: f32[32,1], index: 4, kind: input, shape index: {}]   ;;  %s480_s5 = inlined_call_operand.vmem [shape: bf16[4,32], index: 5, kind: input, shape index: {}]   ;;  %s481_s6 = inlined_call_operand.vmem [shape: f32[4,1], index: 6, kind: input, shape index: {}]   ;;  %s482_s7 = inlined_call_operand.hbm [shape: f32[4,8], index: 7, kind: output, shape index: {}]  }
   0x1   :  { %v28_v0 = vld [vmem:[%s475_s0] sm:$0xff]  ;;  %346 = vset.pattern.permute.xlu0 %v376_v3  ;;  %v36_v4 = vld [vmem:[%s477_s2 + $0x10] sm:$0xff]  ;;  %347 = vset.pattern.permute.xlu1 %v376_v3  ;;  %v37_v7 = vld [vmem:[%s477_s2 + $0x18] sm:$0xff] }
   0x2   :  { %v29_v1 = vpack.c.bf16 %v28_v0, %v28_v0  ;;  %v348_v2 = vld [vmem:[%s476_s1] sm:$0xff]   ;;  %50 = vperm.xlu0 %346, %v36_v4   ;;  %v35_v8 = vld [vmem:[%s477_s2 + $0x8] sm:$0xff] }
   0x3   :  { %321 = vmatprep.mubr.msk.bf16.mxu0 %vm68_vm0, %v348_v2  ;;  %v34_v6 = vld [vmem:[%s477_s2] sm:$0xff] }
   0x4   :  { %341 = vmatprep.subr.msk.bf16.mxu0 %vm68_vm0, %v29_v1  ;;  %v76_v5 = vsel %vm68_vm0, %v29_v1, 0  ;;  %40 = vperm.xlu1 %347, %v34_v6  }
   0x5   :  { %320 = vmatpush3.bf16.xpose.msra.mxu0 %v76_v5 }
   0x6   :  { %12 = vsyncpa [#allocation3], 0  ;;  %v349_v9 = vld [vmem:[%s476_s1 + $0x8] sm:$0xff]   ;;  %55 = vperm.xlu0 %346, %v37_v7   ;;  %v139_v10 = vld [vmem:[%s479_s4 + $0x10] sm:$0xff]  ;;  %vm171_vm1 = vcmask 261120   ;;  %v377_v35 = vmov 0.0  }
   0x7   :  { %v140_v11 = vld [vmem:[%s479_s4 + $0x18] sm:$0xff]  ;;  %v137_v12 = vld [vmem:[%s479_s4] sm:$0xff]  ;;  %v138_v13 = vld [vmem:[%s479_s4 + $0x8] sm:$0xff]  ;;  %333 = vmatprep.subr.bf16.mxu0 %v377_v35  ;;  %vm378_vm2 = vmmov 0   ;;  %s379_s25 = smov [#allocation2]   ;;  %vm284_vm3 = vcmask 60416  }
   0x8   :  { %45 = vperm.xlu1 %347, %v35_v8   ;;  %v234_v14 = vld [vmem:[%s481_s6] sm:$0xf]  ;;  %v351_v34 = vld [vmem:[%s478_s3 + $0x8] sm:$0xff]   ;;  %s292_s26 = sshll.u32 %s379_s25, 4  ;;  %s293_s26 = int_to_ptr.vmem [resolvable:$true] %s292_s26 }
   0x9   :  { %v350_v15 = vld [vmem:[%s478_s3] sm:$0xff]   ;;  %s354_s27 = scalar_lea.vmem %s293_s26, 64  ;;  %p359_p1 = scmp.lt.s32.totalorder %s293_s26, %s293_s26 }
   0xa   :  { %153 = vperm.xlu0 %346, %v139_v10   ;;  %329 = vmatprep.mubr.msk.bf16.mxu1 %vm171_vm1, %v350_v15  ;;  %v233_v54 = vld [vmem:[%s480_s5] sm:$0x3]  ;;  %p355_p0 = scmp.ne.s32.totalorder %s293_s26, %s354_s27  ;;  %p360_p2 = scmp.lt.s32.totalorder %s354_s27, %s354_s27 }
   0xc   :  { %322 = vmatmul.mubr.msk.bf16.vlgmr.msra.gmra.mxu0 %vm68_vm0, %v349_v9  ;;  %158 = vperm.xlu1 %347, %v140_v11   ;;  %p361_p3 = por %p360_p2, %p359_p1 }
   0xd   :  { %337 = vmatprep.mubr.msk.bf16.mxu0 %vm378_vm2, %v377_v35 }
   0xe   :  { %143 = vperm.xlu0 %346, %v137_v12   ;;  %p362_p4 = pnand %p361_p3, %p355_p0 }
  0x10   :  { %148 = vperm.xlu1 %347, %v138_v13  }
  0x12   :  { %237 = vperm.xlu0 %346, %v234_v14  }
  0x7d   :  { %v51_v16 = vpop.permute.xlu0 %50 }
  0x7f   :  { %v41_v17 = vpop.permute.xlu1 %40 }
  0x81   :  { %v56_v21 = vpop.permute.xlu0 %55 }
  0x83   :  { %v46_v25 = vpop.permute.xlu1 %45 }
  0x85   :  { %v154_v36 = vpop.permute.xlu0 %153 }
  0x87   :  { %v159_v37 = vpop.permute.xlu1 %158 }
  0x89   :  { %v144_v42 = vpop.permute.xlu0 %143 }
  0x8b   :  { %v149_v44 = vpop.permute.xlu1 %148 }
  0x8d   :  { %v238_v55 = vpop.permute.xlu0 %237 }
  0xcc   :  { %v323_v18 = vpop.f32.mrf.mxu0 }
  0xcd   :  { %v121_v20 = vadd.f32 %v323_v18, %v51_v16 }
  0xce   :  { %v112_v19 = vpop.f32.mrf.mxu0 }
  0xcf   :  { %v113_v23 = vadd.f32 %v112_v19, %v41_v17  ;;  %v129_v27 = vmax.f32 %v121_v20, 0.0 }
  0xd0   :  { %v324_v22 = vpop.f32.mrf.mxu0 }
  0xd1   :  { %v124_v24 = vadd.f32 %v324_v22, %v56_v21  ;;  %v127_v30 = vmax.f32 %v113_v23, 0.0 }
  0xd2   :  { %v115_v26 = vpop.f32.mrf.mxu0 }
  0xd3   :  { %v130_v28 = vmax.f32 %v124_v24, 0.0  ;;  %v116_v29 = vadd.f32 %v115_v26, %v46_v25 }
  0xd5   :  { %v128_v31 = vmax.f32 %v116_v29, 0.0  ;;  %v132_v32 = vpack.c.bf16 %v130_v28, %v129_v27 }
  0xd7   :  { %v131_v33 = vpack.c.bf16 %v128_v31, %v127_v30  ;;  %325 = vmatprep.subr.bf16.mxu1 %v132_v32 }
  0xd8   :  { %326 = vmatpush3.bf16.msra.mxu1 %v132_v32 }
  0xd9   :  { %327 = vmatprep.subr.bf16.mxu1 %v131_v33 }
  0xdc   :  { %328 = vmatpush3.bf16.msra.mxu1 %v131_v33 }
  0xdf   :  { %330 = vmatmul.mubr.msk.bf16.vlgmr.msra.gmra.mxu1 %vm171_vm1, %v351_v34 }
 0x19f   :  { %v331_v38 = vpop.f32.mrf.mxu1 }
 0x1a0   :  { %v221_v40 = vadd.f32 %v331_v38, %v154_v36 }
 0x1a1   :  { %v212_v39 = vpop.f32.mrf.mxu1 }
 0x1a2   :  { %v229_v46 = vmax.f32 %v221_v40, 0.0  ;;  %v213_v47 = vadd.f32 %v212_v39, %v144_v42 }
 0x1a3   :  { %v332_v41 = vpop.f32.mrf.mxu1 }
 0x1a4   :  { %v224_v43 = vadd.f32 %v332_v41, %v159_v37  ;;  %v227_v52 = vmax.f32 %v213_v47, 0.0 }
 0x1a5   :  { %v215_v45 = vpop.f32.mrf.mxu1 }
 0x1a6   :  { %v230_v48 = vmax.f32 %v224_v43, 0.0  ;;  %v216_v49 = vadd.f32 %v215_v45, %v149_v44 }
 0x1a8   :  { %v232_v50 = vpack.c.bf16 %v230_v48, %v229_v46  ;;  %v228_v51 = vmax.f32 %v216_v49, 0.0 }
 0x1aa   :  { %334 = vmatpush3.bf16.msra.mxu0 %v232_v50  ;;  %v231_v53 = vpack.c.bf16 %v228_v51, %v227_v52 }
 0x1ab   :  { %335 = vmatprep.subr.bf16.mxu0 %v377_v35 }
 0x1ae   :  { %336 = vmatpush3.bf16.msra.mxu0 %v231_v53 }
 0x1b1   :  { %338 = vmatmul.mubr.msk.bf16.vlgmr.msra.gmra.mxu0 %vm171_vm1, %v233_v54 }
 0x271   :  { %v277_v56 = vpop.f32.mrf.mxu0 }
 0x272   :  { %v278_v57 = vadd.f32 %v277_v56, %v238_v55 }
 0x273   :  { %v339_v58 = vpop.f32.mrf.mxu0 }
 0x274   :  { %352 = vtanh.f32 %v278_v57 }
 0x275   :  { %v280_v59 = vpop.f32.mrf.mxu0 }
 0x277   :  { %v340_v60 = vpop.f32.mrf.mxu0 }
 0x281   :  { %v353_v61 = vpop.eup %352 }
 0x282   :  { %285 = vst.msk [vmem:[#allocation2] sm:$0xf] %vm284_vm3, %v353_v61 }
 0x283   :  { %365 = shalt.err (!%p362_p4)
}
 0x284   :  { %295 = dma.vmem_to_hbm [thread:$0]  %s293_s26, 64, %s482_s7, [#allocation3]  }
 0x285   :  { %374 = dma.done.wait [#allocation3], 64  }
 0x286   :  { %375 = vsyncadd [#allocation3], 4294967232 }
 0x287   :  { %299 = vsyncpa [#allocation3], 1 }

</bundles_post_ra>
